<compile_context>
chip_gen: v7x
topology: tpu7x:2x2x1
jax: 0.10.0
libtpu: 0.0.40
codegen_flags: <defaults>
</compile_context>

<pallas_src>
import functools

import jax
import jax.numpy as jnp
from jax.experimental import pallas as pl
from jax.experimental.pallas import tpu as pltpu


# ----------------------------------------------------------------------------
# Pallas kernel: fused tiled Linear (+bias) + ReLU (the wrapped forward).
# ----------------------------------------------------------------------------
def _linear_relu_kernel(x_ref, w_ref, b_ref, o_ref, acc_ref):
    k = pl.program_id(2)

    @pl.when(k == 0)
    def _init():
        acc_ref[...] = jnp.zeros_like(acc_ref)

    # Pure MXU + accumulate in the inner loop (bf16 operands, f32 accumulate).
    acc_ref[...] += jnp.dot(
        x_ref[...], w_ref[...], preferred_element_type=jnp.float32
    )

    # Epilogue only on the last K step.
    @pl.when(k == pl.num_programs(2) - 1)
    def _finalize():
        out = jnp.maximum(acc_ref[...] + b_ref[...], 0.0)
        o_ref[...] = out.astype(o_ref.dtype)


def _round_up(x: int, m: int) -> int:
    return ((x + m - 1) // m) * m


@functools.partial(jax.jit, static_argnames=("tm", "tn", "tk", "out_dtype"))
def linear_relu_pallas(x, w, b, *, tm=256, tn=512, tk=512,
                       out_dtype=jnp.float32):
    """out = relu(x @ w + b), tiled Pallas TPU matmul.

    x: [batch, d_in], w: [d_in, d_hidden], b: [d_hidden] -> [batch, d_hidden].
    """
    batch, d_in = x.shape
    d_in_w, d_hidden = w.shape
    assert d_in == d_in_w, (d_in, d_in_w)
    assert b.shape == (d_hidden,)

    # bf16 operands for the MXU; f32 accumulation and epilogue.
    x = x.astype(jnp.bfloat16)
    w = w.astype(jnp.bfloat16)
    b2 = b.reshape(1, d_hidden).astype(jnp.float32)

    # Clamp tiles to (8, 128)-aligned problem extents.
    tm = min(tm, _round_up(batch, 8))
    tn = min(tn, _round_up(d_hidden, 128))
    tk = min(tk, _round_up(d_in, 128))

    # Pad to tile multiples: zeros along K are harmless for the matmul;
    # padded M/N rows/cols are sliced off after the call.
    mp = _round_up(batch, tm)
    np_ = _round_up(d_hidden, tn)
    kp = _round_up(d_in, tk)
    if (mp, kp) != (batch, d_in):
        x = jnp.pad(x, ((0, mp - batch), (0, kp - d_in)))
    if (kp, np_) != (d_in, d_hidden):
        w = jnp.pad(w, ((0, kp - d_in), (0, np_ - d_hidden)))
    if np_ != d_hidden:
        b2 = jnp.pad(b2, ((0, 0), (0, np_ - d_hidden)))

    grid = (mp // tm, np_ // tn, kp // tk)

    cost = pl.CostEstimate(
        flops=2 * batch * d_in * d_hidden,
        transcendentals=0,
        bytes_accessed=(
            x.size * x.dtype.itemsize
            + w.size * w.dtype.itemsize
            + b2.size * b2.dtype.itemsize
            + mp * np_ * jnp.dtype(out_dtype).itemsize
        ),
    )

    out = pl.pallas_call(
        _linear_relu_kernel,
        out_shape=jax.ShapeDtypeStruct((mp, np_), out_dtype),
        grid_spec=pltpu.PrefetchScalarGridSpec(
            num_scalar_prefetch=0,
            grid=grid,
            in_specs=[
                pl.BlockSpec((tm, tk), lambda i, j, k: (i, k)),   # x tile
                pl.BlockSpec((tk, tn), lambda i, j, k: (k, j)),   # w tile
                pl.BlockSpec((1, tn), lambda i, j, k: (0, j)),    # bias tile
            ],
            out_specs=pl.BlockSpec((tm, tn), lambda i, j, k: (i, j)),
            scratch_shapes=[pltpu.VMEM((tm, tn), jnp.float32)],
        ),
        compiler_params=pltpu.CompilerParams(
            dimension_semantics=("parallel", "parallel", "arbitrary"),
        ),
        cost_estimate=cost,
    )(x, w, b2)

    return out[:batch, :d_hidden]


# ----------------------------------------------------------------------------
# Python-side reproduction of ReuseCache / ReuseForward semantics.
# NOTE: identity-keyed memoization is host-side Python; under jax.jit of a
# larger model it is resolved at trace time, exactly like torch's object-id
# based reuse at graph-capture time.
# ----------------------------------------------------------------------------
class ReuseCache:
    """Minimal stand-in for saeco's ReuseCache: holds the reuse dict."""

    def __init__(self):
        self.forward_reuse_dict = None  # created lazily, as in _reuse()
        self._ancestor = self           # top-level cache is its own ancestor

    @property
    def has_forward_reuse_dict(self):
        return self.forward_reuse_dict is not None


def _reuse(*, x, keyobj, callable, cache: ReuseCache, **kwargs):
    key = (id(keyobj), id(x))
    anc = cache._ancestor
    if not anc.has_forward_reuse_dict:
        anc.forward_reuse_dict = {}
    elif key in anc.forward_reuse_dict:
        return anc.forward_reuse_dict[key]
    # TODO(synk): torch._dynamo.OptimizedModule unwrapping has no JAX analogue.
    output = callable(x, **kwargs)
    if anc.has_forward_reuse_dict:
        anc.forward_reuse_dict[key] = output
    else:
        print(
            "Warning: cache does not have forward_reuse_dict, so no reuse is "
            "possible. This may lead to cache overwrite errors."
        )
    return output


def reuse_forward(*, x, module, cache: ReuseCache, **kwargs):
    return _reuse(x=x, keyobj=module, callable=module, cache=cache, **kwargs)


class InnerLinearReLU:
    """The wrapped module: forward runs the Pallas kernel."""

    def __init__(self, w, b, *, tm=256, tn=512, tk=512):
        self.w = w
        self.b = b
        self.tm, self.tn, self.tk = tm, tn, tk

    def __call__(self, x, **kwargs):
        return linear_relu_pallas(
            x, self.w, self.b, tm=self.tm, tn=self.tn, tk=self.tk
        )


class ReuseForward:
    """JAX/Pallas analogue of saeco.core.ReuseForward."""

    def __init__(self, module):
        self.module = module

    def forward(self, x, *, cache: ReuseCache, **kwargs):
        return reuse_forward(x=x, module=self.module, cache=cache, **kwargs)

    __call__ = forward


# ----------------------------------------------------------------------------
# Demo / self-check (small shapes, single kernel compile).
# ----------------------------------------------------------------------------
if __name__ == "__main__":
    key = jax.random.PRNGKey(0)
    k_x, k_w, k_b = jax.random.split(key, 3)

    # Small shapes that still exercise a real (2, 3, 2) grid with K
    # accumulation when paired with 8/128/128 tiles.
    batch, d_in, d_hidden = 16, 256, 384
    x = jax.random.normal(k_x, (batch, d_in), dtype=jnp.float32)
    w = jax.random.normal(k_w, (d_in, d_hidden), dtype=jnp.float32) * 0.1
    b = jax.random.normal(k_b, (d_hidden,), dtype=jnp.float32) * 0.1

    # Small tiles for the demo; production shapes should keep the larger
    # MXU-aligned defaults (256/512/512).
    inner = InnerLinearReLU(w, b, tm=8, tn=128, tk=128)
    wrapper = ReuseForward(inner)
    cache = ReuseCache()

    out1 = wrapper(x, cache=cache)
    out1 = jax.block_until_ready(out1)

    # Second call with the same (module, x) identity must hit the reuse cache
    # and return the *same object* — ReuseForward's defining semantic.
    out2 = wrapper(x, cache=cache)
    assert out2 is out1, "ReuseForward failed to reuse cached forward output"

    # Numerical check against a plain-JAX reference of the inner forward
    # (same bf16 operands, f32 accumulation).
    ref = jnp.maximum(
        jnp.dot(
            x.astype(jnp.bfloat16),
            w.astype(jnp.bfloat16),
            preferred_element_type=jnp.float32,
        )
        + b,
        0.0,
    )
    assert out1.shape == (batch, d_hidden), out1.shape
    assert jnp.allclose(out1, ref, atol=1e-2, rtol=1e-2), "kernel mismatch"

    print("KERNEL_OK")
</pallas_src>

<mosaic_0001>
module attributes {stable_mosaic.version = 11 : i64} {
  func.func @_linear_relu_kernel(%arg0: i32, %arg1: i32, %arg2: i32, %arg3: memref<8x128xbf16, #tpu.memory_space<vmem>>, %arg4: memref<128x128xbf16, #tpu.memory_space<vmem>>, %arg5: memref<1x128xf32, #tpu.memory_space<vmem>>, %arg6: memref<8x128xf32, #tpu.memory_space<vmem>>, %arg7: memref<8x128xf32, #tpu.memory_space<vmem>>) attributes {dimension_semantics = [#tpu.dimension_semantics<parallel>, #tpu.dimension_semantics<parallel>, #tpu.dimension_semantics<arbitrary>], iteration_bounds = array<i64: 2, 3, 2>, scalar_prefetch = 0 : i64, scratch_operands = 1 : i64, tpu.core_type = #tpu.core_type<tc>, window_params = [{transform_indices = @transform_0, window_bounds = array<i64: 8, 128>}, {transform_indices = @transform_1, window_bounds = array<i64: 128, 128>}, {transform_indices = @transform_2, window_bounds = array<i64: 1, 128>}, {transform_indices = @transform_3, window_bounds = array<i64: 8, 128>}]} {
    %c0_i32 = arith.constant 0 : i32
    %0 = arith.cmpi eq, %arg2, %c0_i32 : i32
    %1 = arith.extui %0 : i1 to i32
    %c0_i32_0 = arith.constant 0 : i32
    %2 = arith.cmpi ne, %1, %c0_i32_0 : i32
    scf.if %2 {
      %cst_9 = arith.constant 0.000000e+00 : f32
      %12 = vector.broadcast %cst_9 : f32 to vector<8x128xf32>
      %c0_10 = arith.constant 0 : index
      %c0_11 = arith.constant 0 : index
      %13 = vector.load %arg7[%c0_10, %c0_11] : memref<8x128xf32, #tpu.memory_space<vmem>>, vector<8x128xf32>
      tpu.vector_store %arg7[%c0_10, %c0_11], %12 {strides = array<i32>} : memref<8x128xf32, #tpu.memory_space<vmem>>, vector<8x128xf32>,
    } else {
    }
    %c0 = arith.constant 0 : index
    %c0_1 = arith.constant 0 : index
    %3 = vector.load %arg7[%c0, %c0_1] : memref<8x128xf32, #tpu.memory_space<vmem>>, vector<8x128xf32>
    %c0_2 = arith.constant 0 : index
    %c0_3 = arith.constant 0 : index
    %4 = vector.load %arg3[%c0_2, %c0_3] : memref<8x128xbf16, #tpu.memory_space<vmem>>, vector<8x128xbf16>
    %c0_4 = arith.constant 0 : index
    %c0_5 = arith.constant 0 : index
    %5 = vector.load %arg4[%c0_4, %c0_5] : memref<128x128xbf16, #tpu.memory_space<vmem>>, vector<128x128xbf16>
    %cst = arith.constant dense<0.000000e+00> : vector<8x128xf32>
    %6 = tpu.matmul %4, %5, %cst {dimension_numbers = #tpu.dot_dimension_numbers<[1], [0], [0], [1], [0, 0, 1, 1], [], []>} : vector<8x128xbf16>, vector<128x128xbf16>, vector<8x128xf32> -> vector<8x128xf32>
    %7 = arith.addf %3, %6 : vector<8x128xf32>
    %c0_6 = arith.constant 0 : index
    %c0_7 = arith.constant 0 : index
    %8 = vector.load %arg7[%c0_6, %c0_7] : memref<8x128xf32, #tpu.memory_space<vmem>>, vector<8x128xf32>
    tpu.vector_store %arg7[%c0_6, %c0_7], %7 {strides = array<i32>} : memref<8x128xf32, #tpu.memory_space<vmem>>, vector<8x128xf32>,
    %c1_i32 = arith.constant 1 : i32
    %9 = arith.cmpi eq, %arg2, %c1_i32 : i32
    %10 = arith.extui %9 : i1 to i32
    %c0_i32_8 = arith.constant 0 : i32
    %11 = arith.cmpi ne, %10, %c0_i32_8 : i32
    scf.if %11 {
      %c0_9 = arith.constant 0 : index
      %c0_10 = arith.constant 0 : index
      %12 = vector.load %arg7[%c0_9, %c0_10] : memref<8x128xf32, #tpu.memory_space<vmem>>, vector<8x128xf32>
      %c0_11 = arith.constant 0 : index
      %c0_12 = arith.constant 0 : index
      %13 = vector.load %arg5[%c0_11, %c0_12] : memref<1x128xf32, #tpu.memory_space<vmem>>, vector<1x128xf32>
      %14 = vector.broadcast %13 : vector<1x128xf32> to vector<8x128xf32>
      %15 = arith.addf %12, %14 : vector<8x128xf32>
      %cst_13 = arith.constant 0.000000e+00 : f32
      %16 = vector.broadcast %cst_13 : f32 to vector<8x128xf32>
      %17 = arith.maximumf %15, %16 : vector<8x128xf32>
      %c0_14 = arith.constant 0 : index
      %c0_15 = arith.constant 0 : index
      %18 = vector.load %arg6[%c0_14, %c0_15] : memref<8x128xf32, #tpu.memory_space<vmem>>, vector<8x128xf32>
      tpu.vector_store %arg6[%c0_14, %c0_15], %17 {strides = array<i32>} : memref<8x128xf32, #tpu.memory_space<vmem>>, vector<8x128xf32>,
    } else {
    }
    return
  }
  func.func @transform_0(%arg0: i32, %arg1: i32, %arg2: i32) -> (i32, i32) {
    %c0_i32 = arith.constant 0 : i32
    return %arg0, %arg2 : i32, i32
  }
  func.func @transform_1(%arg0: i32, %arg1: i32, %arg2: i32) -> (i32, i32) {
    %c0_i32 = arith.constant 0 : i32
    return %arg2, %arg1 : i32, i32
  }
  func.func @transform_2(%arg0: i32, %arg1: i32, %arg2: i32) -> (i32, i32) {
    %c0_i32 = arith.constant 0 : i32
    %c0_i32_0 = arith.constant 0 : i32
    return %c0_i32, %arg1 : i32, i32
  }
  func.func @transform_3(%arg0: i32, %arg1: i32, %arg2: i32) -> (i32, i32) {
    %c0_i32 = arith.constant 0 : i32
    return %arg0, %arg1 : i32, i32
  }
}

</mosaic_0001>

<bundles_post_ra>
// kernel: linear_relu_pallas.1
= control target key start
LH: loop header
LB: loop body
LE: loop exit
PB: predicated region body
PF: predicated region fallthrough
CT: control target
= control target key end

     0   :  { %s1171_s0 = inlined_call_operand.vmem [shape: bf16[16,256], index: 0, kind: input, shape index: {}]   ;;  %s1172_s1 = inlined_call_operand.vmem [shape: bf16[256,384], index: 1, kind: input, shape index: {}]   ;;  %s1173_s2 = inlined_call_operand.vmem [shape: f32[1,384], index: 2, kind: input, shape index: {}]   ;;  %s1174_s3 = inlined_call_operand.hbm [shape: f32[16,384], index: 3, kind: output, shape index: {}]  }
   0x1   :  { %1182 = sst [smem:[#allocation13_spill]] %s1172_s1 }
   0x2   :  { %8 = vsyncpa [#allocation5], 0 }
   0x3   :  { %10 = vsyncpa [#allocation5 + $0x1], 0  ;;  %s925_s12 = smov 0   ;;  %s927_s13 = smov 0  }
   0x4   :  { %s929_s14 = smov 0   ;;  %s931_s15 = smov 0  }
   0x5   :  { %s933_s16 = smov 0   ;;  %s935_s17 = smov 0  }
   0x6   :  { %s937_s18 = smov 0   ;;  %s939_s19 = smov 0  }
   0x7   :  { %s941_s20 = smov 0   ;;  %s943_s21 = smov 0  }
   0x8   :  { %s945_s22 = smov 0   ;;  %s947_s23 = smov 0  }
   0x9 LB: > { %1183 = sst [smem:[#allocation7_spill]] %s887_s20  ;;  %s600_s24 = sadd.s32 4294967295, %s899_s23   ;;  %s899_s23 = sphi %s947_s23, %s16_s23   ;;  %s895_s22 = sphi %s945_s22, %s1199_s22   ;;  %s891_s21 = sphi %s943_s21, %s1198_s21   ;;  %s887_s20 = sphi %s941_s20, %s1197_s20   ;;  %s883_s19 = sphi %s939_s19, %s1196_s19   ;;  %s879_s18 = sphi %s937_s18, %s1195_s18   ;;  %s875_s17 = sphi %s935_s17, %s1194_s17   ;;  %s871_s16 = sphi %s933_s16, %s1204_s16   ;;  %s867_s15 = sphi %s931_s15, %s1203_s15   ;;  %s863_s14 = sphi %s929_s14, %s1202_s14   ;;  %s859_s13 = sphi %s927_s13, %s1201_s13   ;;  %s855_s12 = sphi %s925_s12, %s1200_s12  }
   0xa   : > { %1184 = sst [smem:[#allocation8_spill]] %s891_s21  ;;  %s601_s25 = sadd.s32 4294967294, %s899_s23  }
   0xb   : > { %1185 = sst [smem:[#allocation9_spill]] %s895_s22  ;;  %s28_s26 = sadd.s32 1, %s887_s20 }
   0xc   : > { %s31_s27 = sadd.s32 1, %s891_s21  ;;  %p29_p0 = scmp.ge.s32.totalorder %s28_s26, 2 }
   0xd   : > { %s35_s28 = sadd.s32 1, %s895_s22  ;;  %s72_s29 = sadd.s32 1, %s871_s16 }
   0xe   : > { %p79_p1 = scmp.ne.s32.totalorder %s871_s16, %s867_s15  ;;  %s1206_s26 = smov (%p29_p0, %s28_s26), 0 }
   0xf   : > { %1186 = sst [smem:[#allocation10_spill]] %s1206_s26  ;;  %s1208_s27 = smov (!%p29_p0, %s31_s27), %s891_s21 }
  0x10   : > { %s67_s30 = ssub.s32 %s887_s20, %s1206_s26  ;;  %p80_p2 = scmp.eq.s32.totalorder %s899_s23, 0 }
  0x11   : > { %p33_p3 = scmp.ge.s32.totalorder %s1208_s27, 3  ;;  %s126_s4 = sadd.s32 1, %s863_s14 }
  0x12   : > { %p1000_p4 = por %p80_p2, %p79_p1  ;;  %p136_p5 = scmp.ne.s32.totalorder %s863_s14, %s859_s13 }
  0x13   : > { %s1210_s27 = smov (%p33_p3, %s1208_s27), 0  ;;  %s1212_s28 = smov (!%p33_p3, %s35_s28), %s895_s22 }
  0x14   : > { %1188 = sst [smem:[#allocation11_spill]] %s1210_s27  ;;  %s68_s6 = ssub.s32 %s891_s21, %s1210_s27 }
  0x15   : > { %p137_p6 = scmp.eq.s32.totalorder %s600_s24, 11  ;;  %p37_p7 = scmp.ge.s32.totalorder %s1212_s28, 2 }
  0x16   : > { %s69_s7 = sor.u32 %s68_s6, %s67_s30  ;;  %p142_p10 = scmp.ne.s32.totalorder %s859_s13, %s855_s12 }
  0x17   : > { %p70_p8 = scmp.eq.s32.totalorder %s69_s7, 0  ;;  %p1011_p9 = por %p137_p6, %p136_p5 }
  0x18   : > { %s1214_s28 = smov (%p37_p7, %s1212_s28), 0  ;;  %p143_p11 = scmp.eq.s32.totalorder %s601_s25, 11 }
  0x19   : > { %1190 = sst [smem:[#allocation12_spill]] %s1214_s28  ;;  %s121_s10 = ssub.s32 %s895_s22, %s1214_s28 }
  0x1a   : > { %s1018_s9 = scalar_select %p70_p8, %s871_s16, %s72_s29  }
  0x1b   : > { %s123_s11 = sor.u32 %s121_s10, %s68_s6  ;;  %p1024_p13 = por %p143_p11, %p142_p10 }
  0x1c   : > { %p124_p12 = scmp.eq.s32.totalorder %s123_s11, 0  ;;  %p603_p0 = scmp.ge.s32.totalorder %s899_s23, 12 }
  0x1e   : > { %s1029_s24 = scalar_select %p124_p12, %s863_s14, %s126_s4  }
  0x1f   : > { %159 = sbr.rel (%p603_p0) target bundleno = 58 (0x3a), region = 16 }
  0x26   : > { %173 = sbr.rel (!%p1000_p4) target bundleno = 58 (0x3a), region = 24  ;;  %s175_s29 = sand.u32 (%p1000_p4), 1, %s871_s16  }
  0x27   : > { %s657_s30 = smul.u32 (%p1000_p4), 48, %s887_s20  ;;  %s604_s6 = sshll.u32 (%p1000_p4), %s175_s29, 6 }
  0x28   : > { %s1192_s1 = sld [smem:[#allocation13_spill]] (%p1000_p4)  ;;  %s177_s4 = scalar_lea.vmem (%p1000_p4), [#allocation3], %s604_s6 }
  0x29   : > { %s180_s25 = sadd.s32 (%p1000_p4), %s891_s21, %s657_s30 }
  0x2a   : > { %s607_s7 = sshll.u32 (%p1000_p4), %s180_s25, 2 }
  0x2e   : > { %s1040_s28 = scalar_lea.vmem %s1192_s1, %s607_s7 }
  0x2f   : > { %v198_v0 = vld [vmem:[%s1040_s28] sm:$0xf]  ;;  %v200_v1 = vld [vmem:[%s1040_s28 + $0xc] sm:$0xf]  ;;  %v202_v2 = vld [vmem:[%s1040_s28 + $0x18] sm:$0xf] }
  0x30   : > { %199 = vst [vmem:[%s177_s4] sm:$0xf] %v198_v0  ;;  %201 = vst [vmem:[%s177_s4 + $0x4] sm:$0xf] %v200_v1  ;;  %v204_v3 = vld [vmem:[%s1040_s28 + $0x24] sm:$0xf] }
  0x31   : > { %203 = vst [vmem:[%s177_s4 + $0x8] sm:$0xf] %v202_v2  ;;  %v206_v4 = vld [vmem:[%s1040_s28 + $0x30] sm:$0xf]  ;;  %v208_v5 = vld [vmem:[%s1040_s28 + $0x3c] sm:$0xf] }
  0x32   : > { %205 = vst [vmem:[%s177_s4 + $0xc] sm:$0xf] %v204_v3  ;;  %207 = vst [vmem:[%s177_s4 + $0x10] sm:$0xf] %v206_v4  ;;  %v210_v6 = vld [vmem:[%s1040_s28 + $0x48] sm:$0xf] }
  0x33   : > { %209 = vst [vmem:[%s177_s4 + $0x14] sm:$0xf] %v208_v5  ;;  %v212_v7 = vld [vmem:[%s1040_s28 + $0x54] sm:$0xf]  ;;  %v214_v8 = vld [vmem:[%s1040_s28 + $0x60] sm:$0xf] }
  0x34   : > { %211 = vst [vmem:[%s177_s4 + $0x18] sm:$0xf] %v210_v6  ;;  %213 = vst [vmem:[%s177_s4 + $0x1c] sm:$0xf] %v212_v7  ;;  %v216_v9 = vld [vmem:[%s1040_s28 + $0x6c] sm:$0xf] }
  0x35   : > { %215 = vst [vmem:[%s177_s4 + $0x20] sm:$0xf] %v214_v8  ;;  %v218_v10 = vld [vmem:[%s1040_s28 + $0x78] sm:$0xf]  ;;  %v220_v11 = vld [vmem:[%s1040_s28 + $0x84] sm:$0xf] }
  0x36   : > { %217 = vst [vmem:[%s177_s4 + $0x24] sm:$0xf] %v216_v9  ;;  %219 = vst [vmem:[%s177_s4 + $0x28] sm:$0xf] %v218_v10  ;;  %v222_v12 = vld [vmem:[%s1040_s28 + $0x90] sm:$0xf] }
  0x37   : > { %221 = vst [vmem:[%s177_s4 + $0x2c] sm:$0xf] %v220_v11  ;;  %v224_v13 = vld [vmem:[%s1040_s28 + $0x9c] sm:$0xf]  ;;  %v226_v14 = vld [vmem:[%s1040_s28 + $0xa8] sm:$0xf] }
  0x38   : > { %223 = vst [vmem:[%s177_s4 + $0x30] sm:$0xf] %v222_v12  ;;  %225 = vst [vmem:[%s177_s4 + $0x34] sm:$0xf] %v224_v13  ;;  %v228_v15 = vld [vmem:[%s1040_s28 + $0xb4] sm:$0xf] }
  0x39   : > { %227 = vst [vmem:[%s177_s4 + $0x38] sm:$0xf] %v226_v14  ;;  %229 = vst [vmem:[%s177_s4 + $0x3c] sm:$0xf] %v228_v15 }
  0x3a PF: > { %p608_p1 = scmp.ge.s32.totalorder %s899_s23, 1  ;;  %p289_p2 = scmp.lt.s32.totalorder %s899_s23, 13 }
  0x3c   : > { %p290_p3 = pnand %p608_p1, %p289_p2 }
  0x3d   : > { %s296_s5 = sand.u32 (!%p290_p3), 1, %s867_s15   ;;  %s1178_s28 = sand.u32 (!%p290_p3), 1, %s859_s13  }
  0x3e   : > { %293 = sbr.rel (%p290_p3) target bundleno = 364 (0x16c), region = 69  ;;  %s609_s29 = sshll.u32 (!%p290_p3), %s296_s5, 6 }
  0x3f   : > { %s1064_s30 = sshll.u32 (!%p290_p3), %s1178_s28, 3  ;;  %p330_p4 = scmp.lt.s32.totalorder (!%p290_p3), %s883_s19, 1 }
  0x40   : > { %p332_p5 = scmp.lt.s32.totalorder (!%p290_p3), %s875_s17, 1  ;;  %p339_p6 = scmp.lt.s32.totalorder (!%p290_p3), %s879_s18, 2 }
  0x41   : > { %s1083_s21 = scalar_lea.vmem (!%p290_p3), [#allocation3], %s609_s29  ;;  %s329_s20 = scalar_lea.vmem (!%p290_p3), [#allocation4], %s1064_s30 }
  0x42   : > { %p613_p7 = scmp.ne.s32.totalorder (!%p290_p3), %s875_s17, 0 }
  0x45   : > { %s331_s6 = scalar_select %p330_p4, %s883_s19, 1 }
  0x46   : > { %s333_s25 = scalar_select %p332_p5, %s875_s17, 1 }
  0x47   : > { %s611_s7 = sshll.u32 %s331_s6, 1  ;;  %346 = sbr.rel (%p613_p7) target bundleno = 78 (0x4e), region = 77  ;;  %v901_v16 = vmov (!%p613_p7), 0.0  }
  0x48   : > { %s335_s10 = sadd.s32 %s611_s7, %s333_s25  ;;  %347 = vst [vmem:[#allocation2] sm:$0xff] (!%p613_p7), %v901_v16 }
  0x49   : > { %s612_s11 = sshll.u32 %s335_s10, 2 }
  0x4a   : > { %s1074_s26 = scalar_lea.vmem %s1171_s0, %s612_s11 }
  0x4b   : > { %s1077_s15 = scalar_select %p339_p6, %s879_s18, 2 }
  0x4d   : > { %s341_s22 = scalar_lea.vmem %s1173_s2, %s1077_s15 }
  0x4e PF: > { %v765_v17 = vld [vmem:[%s1083_s21] sm:$0xff]   ;;  %v902_v18 = vmov 0.0   ;;  %v766_v19 = vld [vmem:[%s1083_s21 + $0x8] sm:$0xff]   ;;  %vm903_vm0 = vmmov 0   ;;  %v767_v20 = vld [vmem:[%s1083_s21 + $0x10] sm:$0xff]   ;;  %p622_p8 = scmp.ne.s32.totalorder %s875_s17, 1 }
  0x4f   : > { %637 = vmatprep.subr.bf16.mxu0 %v902_v18  ;;  %653 = vmatprep.mubr.msk.bf16.mxu0 %vm903_vm0, %v902_v18  ;;  %v768_v21 = vld [vmem:[%s1083_s21 + $0x18] sm:$0xff]   ;;  %v769_v22 = vld [vmem:[%s1083_s21 + $0x20] sm:$0xff]   ;;  %v770_v23 = vld [vmem:[%s1083_s21 + $0x28] sm:$0xff]  }
  0x50   : > { %638 = vmatpush3.bf16.msra.mxu0 %v765_v17  ;;  %v771_v24 = vld [vmem:[%s1083_s21 + $0x30] sm:$0xff]   ;;  %v772_v25 = vld [vmem:[%s1083_s21 + $0x38] sm:$0xff]  }
  0x51   : > { %639 = vmatprep.subr.bf16.mxu0 %v902_v18  ;;  %v349_v26 = vld [vmem:[%s1074_s26] sm:$0xf] }
  0x52   : > { %v348_v27 = vld [vmem:[#allocation2] sm:$0xff] }
  0x53   : > { %v623_v34 = vld [vmem:[%s341_s22] ss:$0 sm:$0xff] (!%p622_p8) }
  0x54   : > { %640 = vmatpush3.bf16.msra.mxu0 %v766_v19 }
  0x55   : > { %641 = vmatprep.subr.bf16.mxu0 %v902_v18 }
  0x58   : > { %642 = vmatpush3.bf16.msra.mxu0 %v767_v20 }
  0x59   : > { %643 = vmatprep.subr.bf16.mxu0 %v902_v18 }
  0x5c   : > { %644 = vmatpush3.bf16.msra.mxu0 %v768_v21 }
  0x5d   : > { %645 = vmatprep.subr.bf16.mxu0 %v902_v18 }
  0x60   : > { %646 = vmatpush3.bf16.msra.mxu0 %v769_v22 }
  0x61   : > { %647 = vmatprep.subr.bf16.mxu0 %v902_v18 }
  0x64   : > { %648 = vmatpush3.bf16.msra.mxu0 %v770_v23 }
  0x65   : > { %649 = vmatprep.subr.bf16.mxu0 %v902_v18 }
  0x68   : > { %650 = vmatpush3.bf16.msra.mxu0 %v771_v24 }
  0x69   : > { %651 = vmatprep.subr.bf16.mxu0 %v902_v18 }
  0x6c   : > { %652 = vmatpush3.bf16.msra.mxu0 %v772_v25 }
  0x6f   : > { %654 = vmatmul.mubr.bf16.vlgmr.msra.gmra.mrb[0].mxu0 %v349_v26 }
 0x13f   : > { %459 = sbr.rel (%p622_p8) target bundleno = 338 (0x152), region = 81 }
 0x142   : > { %v448_v28 = vpop.f32.mrb[0].mxu0 }
 0x143   : > { %v454_v29 = vadd.f32 %v448_v28, %v348_v27  ;;  %v655_v30 = vpop.f32.mrb[1].mxu0 }
 0x144   : > { %v451_v31 = vpop.f32.mrb[2].mxu0 }
 0x145   : > { %455 = vst [vmem:[#allocation2] sm:$0xff] %v454_v29  ;;  %v656_v32 = vpop.f32.mrb[3].mxu0 }
 0x14c   : > { %v460_v33 = vld [vmem:[#allocation2] sm:$0xff] }
 0x14d   : > { %v468_v35 = vadd.f32 %v623_v34, %v460_v33 }
 0x14f   : > { %v469_v36 = vmax.f32 %v468_v35, 0.0 }
 0x151   : > { %470 = vst [vmem:[%s329_s20] sm:$0xff] %v469_v36 }
 0x152 PF: > { %s658_s17 = smul.u32 3, %s883_s19  ;;  %s487_s21 = sshll.u32 %s329_s20, 4  ;;  %s1108_s21 = int_to_ptr.vmem [resolvable:$true] %s487_s21 }
 0x153   : > { %s1193_s7 = sand.u32 1, %s859_s13   ;;  %s773_s11 = scalar_lea.vmem %s1108_s21, 128 }
 0x154   : > { %s483_s26 = sadd.s32 %s879_s18, %s658_s17  ;;  %s472_s10 = scalar_lea.sflag [#allocation5], %s1193_s7 }
 0x155   : > { %s625_s22 = sshll.u32 %s483_s26, 7  ;;  %p774_p10 = scmp.ne.s32.totalorder %s1108_s21, %s773_s11 }
 0x156   : > { %s485_s25 = scalar_lea.hbm %s1174_s3, %s625_s22  ;;  %s904_s19 = smov [#allocation4]  }
 0x157   : > { %p775_p11 = pnand %p774_p10, %p1011_p9  ;;  %s777_s20 = sshll.u32 %s904_s19, 4  ;;  %s778_s20 = int_to_ptr.vmem [resolvable:$false] %s777_s20 }
 0x158   : > { %s779_s18 = scalar_lea.vmem %s778_s20, 256  ;;  %p780_p0 = scmp.lt.s32.totalorder %s1108_s21, %s778_s20 }
 0x159   : > { %p776_p12 = pneg %p775_p11  ;;  %p781_p1 = scmp.lt.s32.totalorder %s779_s18, %s773_s11 }
 0x15b   : > { %p782_p2 = por %p781_p1, %p780_p0 }
 0x15d   : > { %p783_p3 = pnand %p782_p2, %p776_p12 }
 0x15f   : > { %786 = shalt.err (!%p783_p3)
}
 0x160   : > { %s787_s30 = scalar_lea.hbm %s485_s25, 128  ;;  %s791_s5 = scalar_lea.hbm %s1174_s3, 768 }
 0x161   : > { %p788_p4 = scmp.ne.s32.totalorder %s485_s25, %s787_s30  ;;  %p792_p7 = scmp.lt.u32.totalorder %s485_s25, %s1174_s3 }
 0x162   : > { %p793_p8 = scmp.lt.u32.totalorder %s791_s5, %s787_s30  ;;  %p795_p11 = scmp.lt.u32.totalorder %s787_s30, %s485_s25 }
 0x163   : > { %p789_p5 = pnand %p788_p4, %p1011_p9 }
 0x164   : > { %p794_p10 = por %p793_p8, %p792_p7 }
 0x165   : > { %p790_p6 = pneg %p789_p5 }
 0x166   : > { %p796_p0 = por %p795_p11, %p794_p10 }
 0x168   : > { %p797_p12 = pnand %p796_p0, %p790_p6 }
 0x16a   : > { %800 = shalt.err (!%p797_p12)
}
 0x16b   : > { %659 = dma.vmem_to_hbm [thread:$0]  (%p1011_p9), %s1108_s21, 128, %s485_s25, %s472_s10  }
 0x16c PF: > { %p665_p1 = scmp.ge.s32.totalorder %s899_s23, 2  ;;  %s499_s17 = sand.u32 1, %s855_s12  }
 0x16d   : > { %s500_s26 = scalar_lea.sflag [#allocation5], %s499_s17 }
 0x16e   : > { %p662_p2 = pnand %p665_p1, %p1024_p13 }
 0x170   : > { %850 = dma.done.wait (!%p662_p2), %s500_s26, 128  }
 0x171   : > { %852 = vsyncadd (!%p662_p2), %s500_s26, 4294967168  ;;  %s16_s23 = sadd.s32 1, %s899_s23   ;;  %s1194_s17 = sld [smem:[#allocation7_spill]] }
 0x172   : > { %p13_p3 = scmp.ge.s32.totalorder %s16_s23, 14   ;;  %s1195_s18 = sld [smem:[#allocation8_spill]] }
 0x173   : > { %s1196_s19 = sld [smem:[#allocation9_spill]]  ;;  %s1197_s20 = sld [smem:[#allocation10_spill]] }
 0x174   : > { %s1198_s21 = sld [smem:[#allocation11_spill]]  ;;  %s1199_s22 = sld [smem:[#allocation12_spill]] }
 0x175   : > { %s1200_s12 = smov %s859_s13  ;;  %s1201_s13 = smov %s863_s14 }
 0x176   : > { %s1202_s14 = smov %s1029_s24  ;;  %s1203_s15 = smov %s871_s16 }
 0x177   : > { %s1204_s16 = smov %s1018_s9  ;;  %15 = sbr.rel (!%p13_p3) target bundleno = 9 (0x9), region = 127 }
 0x17e   :  { %505 = vsyncpa [#allocation5], 1 }
 0x17f   :  { %507 = vsyncpa [#allocation5 + $0x1], 1 }

</bundles_post_ra>
